<compile_context>
chip_gen: v7x
topology: tpu7x:2x2x1
jax: 0.10.0
libtpu: 0.0.40
codegen_flags: <defaults>
</compile_context>

<pallas_src>
import functools

import jax
import jax.numpy as jnp
from jax.experimental import pallas as pl
from jax.experimental.pallas import tpu as pltpu


def _cdiv(a, b):
    return -(-a // b)


def _round_up(a, b):
    return _cdiv(a, b) * b


def _vmem_capacity_bytes():
    """Generation-aware VMEM capacity; conservative (v7x per-TC) fallback."""
    try:
        info = pltpu.get_tpu_info()
        cap = getattr(info, "vmem_capacity_bytes", None)
        if cap:
            return int(cap)
    except Exception:
        pass
    return 64 * 1024 * 1024


def _sigmoid_f32(s, approx):
    """Sigmoid on an f32 array; exp + (approximate) reciprocal stay on the EUP."""
    if approx:
        return pl.reciprocal(1.0 + jnp.exp(-s), approx=True)
    return 1.0 / (1.0 + jnp.exp(-s))


def _pick_spatial_tile(hw, C, dtype_bytes, budget_bytes, lane_cap):
    """Lane tile (multiple of 128) for the tiled path.

    Prefers an exact divisor of HW (no ragged tile, unmasked stores) when HW is a
    multiple of 128 and the divisor is not degenerately small; otherwise returns
    a balanced tile and lets Pallas mask the ragged tail of the last block.
    """
    hw128 = _round_up(hw, 128)
    # Per-lane VMEM bytes: double-buffered in/out tiles + f32 temporaries.
    per_lane = (4 * dtype_bytes + 16) * C
    fixed = C * C * 4 + 8 * C * 4
    max_tile = max(128, ((max(budget_bytes - fixed, per_lane * 128)
                          // per_lane) // 128) * 128)
    max_tile = min(max_tile, lane_cap, hw128)

    if hw128 <= max_tile:
        return hw                      # single block == full dim (always legal)

    if hw % 128 == 0:
        units = hw // 128
        best = None
        for d in range(min(max_tile // 128, units), 0, -1):
            if units % d == 0:
                best = d
                break
        if best is not None and (2 * 128 * best >= max_tile or 128 * best >= hw):
            return 128 * best          # exact divisor: no ragged last tile

    # Balanced ragged tiling; last block starts in-bounds, tail is masked.
    n_tiles = _cdiv(hw128, max_tile)
    return _round_up(_cdiv(hw128, n_tiles), 128)


# ----------------------------------------------------------------------------
# Kernels
# ----------------------------------------------------------------------------
def _scse_tiled_kernel(x_ref, cse_ref, ws_ref, bs_ref, o_ref, *, mm_dtype, approx):
    """Spatial-tiled kernel: sSE 1x1 conv + combine; cSE gate precomputed in JAX."""
    x = x_ref[0]                                               # (C, T), I/O dtype
    # sSE: per-pixel 1x1 conv C->C on the MXU (bf16 operands, f32 accumulation).
    s = jnp.dot(ws_ref[...], x.astype(mm_dtype),
                preferred_element_type=jnp.float32) + bs_ref[...]
    sse = _sigmoid_f32(s, approx)                              # (C, T) f32
    gate = cse_ref[0] + sse                                    # (C,1)+(C,T)->(C,T)
    o_ref[0] = (x.astype(jnp.float32) * gate).astype(o_ref.dtype)


def _scse_fused_kernel(x_ref, w1_ref, b1_ref, w2_ref, b2_ref, ws_ref, bs_ref,
                       o_ref, *, mm_dtype, approx):
    """Fully fused per-image kernel: cSE squeeze + sSE + combine on one VMEM slab."""
    x = x_ref[0]                                               # (C, HW), I/O dtype
    xf = x.astype(jnp.float32)
    C = x.shape[0]

    # ---- cSE squeeze: exact global average pool over HW (lanes), f32 ----------
    mean = jnp.mean(xf, axis=-1, keepdims=True)                # (C, 1)
    # Lane-broadcast to an MXU-friendly width; all 128 columns are identical.
    mean_b = jnp.broadcast_to(mean, (C, 128))                  # (C, 128)
    h = jnp.dot(w1_ref[...], mean_b,
                preferred_element_type=jnp.float32) + b1_ref[...]
    h = jnp.maximum(h, 0.0)                                    # (Cmid_pad, 128)
    z = jnp.dot(w2_ref[...], h,
                preferred_element_type=jnp.float32) + b2_ref[...]
    cse = _sigmoid_f32(z[:, 0:1], approx)                      # (C, 1)

    # ---- sSE: per-pixel 1x1 conv C->C on the MXU ------------------------------
    s = jnp.dot(ws_ref[...], x.astype(mm_dtype),
                preferred_element_type=jnp.float32) + bs_ref[...]
    sse = _sigmoid_f32(s, approx)                              # (C, HW) f32

    # Fused combine: x*cSE + x*sSE == x * (cSE + sSE).
    o_ref[0] = (xf * (cse + sse)).astype(o_ref.dtype)


# ----------------------------------------------------------------------------
# Wrapper
# ----------------------------------------------------------------------------
def scse_forward(x, params, *, approx_sigmoid=True, mxu_bf16=True,
                 fuse_squeeze=None, lane_tile_cap=None):
    """x: (N, C, H, W); params: (w1, b1, w2, b2, ws, bs) -- 1x1 conv weights as
    2-D matrices, biases as (Cout, 1) (or (Cout,)).  Output dtype follows x.

    fuse_squeeze: None = auto (fuse when the per-image slab fits VMEM),
                  True/False = force.  lane_tile_cap: override the lane tile cap
                  of the tiled path (testing / tuning)."""
    N, C, H, W = x.shape
    HW = H * W
    w1, b1, w2, b2, ws, bs = params
    f32 = jnp.float32
    db = jnp.dtype(x.dtype).itemsize

    # bf16 MXU operands (f32 accumulation) cut the f32-emulation passes ~3x.
    mm_dtype = jnp.bfloat16 if (mxu_bf16 or x.dtype == jnp.bfloat16) else f32

    vmem_cap = _vmem_capacity_bytes()
    budget = vmem_cap // 2                       # headroom for double-buffering etc.

    x2 = x.reshape(N, C, HW)                     # free (contiguous trailing dims)
    ws_k = ws.astype(mm_dtype)
    bs_k = bs.astype(f32).reshape(-1, 1)

    # Conservative per-image VMEM footprint of the fused path:
    # 2x double-buffered in/out slabs + f32 temporaries + weights.
    fused_est = C * HW * (4 * db + 12) + (C * C + 8 * C) * 4
    use_fused = (fused_est <= budget) if fuse_squeeze is None else bool(fuse_squeeze)

    if use_fused:
        # Pad the tiny hidden dim (C//re) to the f32 sublane pack once on the host
        # (zero rows/cols are exact: relu(0+0)=0 and zero w2 columns contribute 0).
        Cmid = w1.shape[0]
        Cm_pad = max(8, _round_up(Cmid, 8))
        w1p = jnp.zeros((Cm_pad, C), f32).at[:Cmid, :].set(w1.astype(f32))
        b1p = jnp.zeros((Cm_pad, 1), f32).at[:Cmid, :].set(
            b1.astype(f32).reshape(-1, 1))
        w2p = jnp.zeros((C, Cm_pad), f32).at[:, :Cmid].set(w2.astype(f32))
        b2p = b2.astype(f32).reshape(-1, 1)

        vmem_limit = int(min(vmem_cap * 3 // 4,
                             max(32 << 20, fused_est + (4 << 20))))
        kern = functools.partial(_scse_fused_kernel,
                                 mm_dtype=mm_dtype, approx=approx_sigmoid)
        out = pl.pallas_call(
            kern,
            out_shape=jax.ShapeDtypeStruct((N, C, HW), x.dtype),
            grid_spec=pltpu.PrefetchScalarGridSpec(
                num_scalar_prefetch=0,
                grid=(N,),
                in_specs=[
                    pl.BlockSpec((1, C, HW), lambda n: (n, 0, 0)),     # x slab
                    pl.BlockSpec((Cm_pad, C), lambda n: (0, 0)),       # w1 (padded)
                    pl.BlockSpec((Cm_pad, 1), lambda n: (0, 0)),       # b1 (padded)
                    pl.BlockSpec((C, Cm_pad), lambda n: (0, 0)),       # w2 (padded)
                    pl.BlockSpec((C, 1), lambda n: (0, 0)),            # b2
                    pl.BlockSpec((C, C), lambda n: (0, 0)),            # ws
                    pl.BlockSpec((C, 1), lambda n: (0, 0)),            # bs
                ],
                out_specs=pl.BlockSpec((1, C, HW), lambda n: (n, 0, 0)),
            ),
            compiler_params=pltpu.CompilerParams(
                dimension_semantics=("parallel",),
                vmem_limit_bytes=vmem_limit,
            ),
        )(x2, w1p, b1p, w2p, b2p, ws_k, bs_k)
        return out.reshape(N, C, H, W)

    # ---- tiled fallback: cSE squeeze hoisted to JAX (O(N*C*C/re) work) --------
    mean = jnp.mean(x.astype(f32), axis=(2, 3))                          # (N, C)
    h = jnp.maximum(mean @ w1.astype(f32).T + b1.astype(f32).reshape(1, -1), 0.0)
    cse = jax.nn.sigmoid(h @ w2.astype(f32).T + b2.astype(f32).reshape(1, -1))
    cse = cse[:, :, None]                                                # (N, C, 1)

    lane_cap = lane_tile_cap or (8192 if vmem_cap >= 96 * 1024 * 1024 else 4096)
    tile = _pick_spatial_tile(HW, C, db, budget, lane_cap)
    n_tiles = _cdiv(HW, tile)
    tile_est = tile * C * (4 * db + 16) + (C * C + 8 * C) * 4
    vmem_limit = int(min(vmem_cap * 3 // 4, max(32 << 20, tile_est + (4 << 20))))

    kern = functools.partial(_scse_tiled_kernel,
                             mm_dtype=mm_dtype, approx=approx_sigmoid)
    out = pl.pallas_call(
        kern,
        # Un-padded output; any ragged last tile is handled by Pallas boundary
        # masking (no jnp.pad on input, no slice on output).
        out_shape=jax.ShapeDtypeStruct((N, C, HW), x.dtype),
        grid_spec=pltpu.PrefetchScalarGridSpec(
            num_scalar_prefetch=0,
            grid=(N, n_tiles),
            in_specs=[
                pl.BlockSpec((1, C, tile), lambda n, s: (n, 0, s)),   # x tile
                pl.BlockSpec((1, C, 1), lambda n, s: (n, 0, 0)),      # cSE gate
                pl.BlockSpec((C, C), lambda n, s: (0, 0)),            # sSE weight
                pl.BlockSpec((C, 1), lambda n, s: (0, 0)),            # sSE bias
            ],
            out_specs=pl.BlockSpec((1, C, tile), lambda n, s: (n, 0, s)),
        ),
        compiler_params=pltpu.CompilerParams(
            dimension_semantics=("parallel", "parallel"),
            vmem_limit_bytes=vmem_limit,
        ),
    )(x2, cse, ws_k, bs_k)
    return out.reshape(N, C, H, W)


def scse_reference(x, params):
    """Pure-JAX reference matching PyTorch SCSEModule.forward (exact sigmoid)."""
    w1, b1, w2, b2, ws, bs = params
    xf = x.astype(jnp.float32)
    mean = jnp.mean(xf, axis=(2, 3), keepdims=True)                       # (N,C,1,1)
    h = jnp.einsum('oc,nchw->nohw', w1, mean) + b1[None, :, None]
    h = jnp.maximum(h, 0.0)
    cse = jax.nn.sigmoid(jnp.einsum('oc,nchw->nohw', w2, h) + b2[None, :, None])
    sse = jax.nn.sigmoid(jnp.einsum('oc,nchw->nohw', ws, xf) + bs[None, :, None])
    return xf * cse + xf * sse


if __name__ == "__main__":
    # Shapes consistent with the module: ch=32, re=16 -> hidden channels = 2.
    N, C, H, W = 2, 32, 16, 16
    RE = 16
    Cmid = C // RE

    key = jax.random.PRNGKey(0)
    kx, k1, k2, k3, k4, k5, k6, k7 = jax.random.split(key, 8)

    x = jax.random.normal(kx, (N, C, H, W), dtype=jnp.float32)
    w1 = 0.1 * jax.random.normal(k1, (Cmid, C), dtype=jnp.float32)   # cSE conv1: C -> C//re
    b1 = 0.1 * jax.random.normal(k2, (Cmid, 1), dtype=jnp.float32)
    w2 = 0.1 * jax.random.normal(k3, (C, Cmid), dtype=jnp.float32)   # cSE conv2: C//re -> C
    b2 = 0.1 * jax.random.normal(k4, (C, 1), dtype=jnp.float32)
    ws = 0.1 * jax.random.normal(k5, (C, C), dtype=jnp.float32)      # sSE conv: C -> C
    bs = 0.1 * jax.random.normal(k6, (C, 1), dtype=jnp.float32)
    params = (w1, b1, w2, b2, ws, bs)

    ref = scse_reference(x, params)

    # Tolerances account for the approximate-reciprocal sigmoid (~1e-3 rel) and
    # bf16 MXU operands for the sSE logits (gate is insensitive to that).
    TOL = dict(atol=5e-2, rtol=5e-2)

    # 1) Fused path (auto): cSE squeeze inside the kernel, x read from HBM once.
    out = jax.block_until_ready(scse_forward(x, params))
    assert out.shape == (N, C, H, W) and out.dtype == x.dtype
    assert jnp.allclose(out, ref, **TOL), "fused f32 mismatch vs reference"

    # 2) Tiled fallback path (large-HW shape class), forced at this small shape.
    out_t = jax.block_until_ready(scse_forward(x, params, fuse_squeeze=False))
    assert jnp.allclose(out_t, ref, **TOL), "tiled f32 mismatch vs reference"

    # 3) Ragged spatial edge: HW=400 with a forced 128-lane tile -> the last tile
    #    is partial and handled by Pallas boundary masking (no pad / no slice).
    Hr = Wr = 20
    xr = jax.random.normal(k7, (N, C, Hr, Wr), dtype=jnp.float32)
    ref_r = scse_reference(xr, params)
    out_r = jax.block_until_ready(
        scse_forward(xr, params, fuse_squeeze=False, lane_tile_cap=128))
    assert out_r.shape == (N, C, Hr, Wr)
    assert jnp.allclose(out_r, ref_r, **TOL), "ragged-tile mismatch vs reference"

    # 4) bf16 I/O path: halves HBM traffic for x/ws/out; accumulation, gates and
    #    all elementwise math stay f32 inside the kernel.
    out_bf16 = jax.block_until_ready(scse_forward(x.astype(jnp.bfloat16), params))
    assert out_bf16.dtype == jnp.bfloat16
    assert jnp.allclose(out_bf16.astype(jnp.float32), ref, atol=1e-1, rtol=1e-1), \
        "bf16 mismatch vs reference"

    print("KERNEL_OK")
</pallas_src>

<mosaic_0001>
module attributes {stable_mosaic.version = 11 : i64} {
  func.func @_scse_fused_kernel(%arg0: i32, %arg1: memref<1x32x256xf32, #tpu.memory_space<vmem>>, %arg2: memref<8x32xf32, #tpu.memory_space<vmem>>, %arg3: memref<8x1xf32, #tpu.memory_space<vmem>>, %arg4: memref<32x8xf32, #tpu.memory_space<vmem>>, %arg5: memref<32x1xf32, #tpu.memory_space<vmem>>, %arg6: memref<32x32xbf16, #tpu.memory_space<vmem>>, %arg7: memref<32x1xf32, #tpu.memory_space<vmem>>, %arg8: memref<1x32x256xf32, #tpu.memory_space<vmem>>) attributes {dimension_semantics = [#tpu.dimension_semantics<parallel>], iteration_bounds = array<i64: 2>, scalar_prefetch = 0 : i64, scratch_operands = 0 : i64, tpu.core_type = #tpu.core_type<tc>, window_params = [{transform_indices = @transform_0, window_bounds = array<i64: 1, 32, 256>}, {pipeline_mode = #tpu.pipeline_mode<synchronous>, transform_indices = @transform_1, window_bounds = array<i64: 8, 32>}, {pipeline_mode = #tpu.pipeline_mode<synchronous>, transform_indices = @transform_2, window_bounds = array<i64: 8, 1>}, {pipeline_mode = #tpu.pipeline_mode<synchronous>, transform_indices = @transform_3, window_bounds = array<i64: 32, 8>}, {pipeline_mode = #tpu.pipeline_mode<synchronous>, transform_indices = @transform_4, window_bounds = array<i64: 32, 1>}, {pipeline_mode = #tpu.pipeline_mode<synchronous>, transform_indices = @transform_5, window_bounds = array<i64: 32, 32>}, {pipeline_mode = #tpu.pipeline_mode<synchronous>, transform_indices = @transform_6, window_bounds = array<i64: 32, 1>}, {transform_indices = @transform_7, window_bounds = array<i64: 1, 32, 256>}]} {
    %c0 = arith.constant 0 : index
    %c0_0 = arith.constant 0 : index
    %c0_1 = arith.constant 0 : index
    %0 = vector.load %arg1[%c0, %c0_0, %c0_1] : memref<1x32x256xf32, #tpu.memory_space<vmem>>, vector<1x32x256xf32>
    %1 = vector.shape_cast %0 : vector<1x32x256xf32> to vector<32x256xf32>
    %cst = arith.constant dense<0.000000e+00> : vector<32xf32>
    %2 = vector.multi_reduction <add>, %1, %cst [1] : vector<32x256xf32> to vector<32xf32>
    %3 = vector.shape_cast %2 : vector<32xf32> to vector<32x1xf32>
    %cst_2 = arith.constant 2.560000e+02 : f32
    %4 = vector.broadcast %cst_2 : f32 to vector<32x1xf32>
    %5 = arith.divf %3, %4 : vector<32x1xf32>
    %6 = vector.shape_cast %5 : vector<32x1xf32> to vector<32x1xf32>
    %7 = vector.broadcast %6 : vector<32x1xf32> to vector<32x128xf32>
    %c0_3 = arith.constant 0 : index
    %c0_4 = arith.constant 0 : index
    %8 = vector.load %arg2[%c0_3, %c0_4] : memref<8x32xf32, #tpu.memory_space<vmem>>, vector<8x32xf32>
    %cst_5 = arith.constant dense<0.000000e+00> : vector<8x128xf32>
    %9 = tpu.matmul %8, %7, %cst_5 {dimension_numbers = #tpu.dot_dimension_numbers<[1], [0], [0], [1], [0, 0, 1, 1], [], []>} : vector<8x32xf32>, vector<32x128xf32>, vector<8x128xf32> -> vector<8x128xf32>
    %c0_6 = arith.constant 0 : index
    %c0_7 = arith.constant 0 : index
    %10 = vector.load %arg3[%c0_6, %c0_7] : memref<8x1xf32, #tpu.memory_space<vmem>>, vector<8x1xf32>
    %11 = vector.broadcast %10 : vector<8x1xf32> to vector<8x128xf32>
    %12 = arith.addf %9, %11 : vector<8x128xf32>
    %cst_8 = arith.constant 0.000000e+00 : f32
    %13 = vector.broadcast %cst_8 : f32 to vector<8x128xf32>
    %14 = arith.maximumf %12, %13 : vector<8x128xf32>
    %c0_9 = arith.constant 0 : index
    %c0_10 = arith.constant 0 : index
    %15 = vector.load %arg4[%c0_9, %c0_10] : memref<32x8xf32, #tpu.memory_space<vmem>>, vector<32x8xf32>
    %cst_11 = arith.constant dense<0.000000e+00> : vector<32x128xf32>
    %16 = tpu.matmul %15, %14, %cst_11 {dimension_numbers = #tpu.dot_dimension_numbers<[1], [0], [0], [1], [0, 0, 1, 1], [], []>} : vector<32x8xf32>, vector<8x128xf32>, vector<32x128xf32> -> vector<32x128xf32>
    %c0_12 = arith.constant 0 : index
    %c0_13 = arith.constant 0 : index
    %17 = vector.load %arg5[%c0_12, %c0_13] : memref<32x1xf32, #tpu.memory_space<vmem>>, vector<32x1xf32>
    %18 = vector.broadcast %17 : vector<32x1xf32> to vector<32x128xf32>
    %19 = arith.addf %16, %18 : vector<32x128xf32>
    %20 = vector.extract_strided_slice %19 {offsets = [0, 0], sizes = [32, 1], strides = [1, 1]} : vector<32x128xf32> to vector<32x1xf32>
    %cst_14 = arith.constant 0.000000e+00 : f32
    %21 = vector.broadcast %cst_14 : f32 to vector<32x1xf32>
    %22 = arith.subf %21, %20 : vector<32x1xf32>
    %23 = math.exp %22 : vector<32x1xf32>
    %cst_15 = arith.constant 1.000000e+00 : f32
    %24 = vector.broadcast %cst_15 : f32 to vector<32x1xf32>
    %25 = arith.addf %24, %23 : vector<32x1xf32>
    %26 = tpu.reciprocal %25 {approx = true} : vector<32x1xf32> -> vector<32x1xf32>
    %c0_16 = arith.constant 0 : index
    %c0_17 = arith.constant 0 : index
    %27 = vector.load %arg6[%c0_16, %c0_17] : memref<32x32xbf16, #tpu.memory_space<vmem>>, vector<32x32xbf16>
    %28 = arith.truncf %1 : vector<32x256xf32> to vector<32x256xbf16>
    %cst_18 = arith.constant dense<0.000000e+00> : vector<32x256xf32>
    %29 = tpu.matmul %27, %28, %cst_18 {dimension_numbers = #tpu.dot_dimension_numbers<[1], [0], [0], [1], [0, 0, 1, 1], [], []>} : vector<32x32xbf16>, vector<32x256xbf16>, vector<32x256xf32> -> vector<32x256xf32>
    %c0_19 = arith.constant 0 : index
    %c0_20 = arith.constant 0 : index
    %30 = vector.load %arg7[%c0_19, %c0_20] : memref<32x1xf32, #tpu.memory_space<vmem>>, vector<32x1xf32>
    %31 = vector.broadcast %30 : vector<32x1xf32> to vector<32x256xf32>
    %32 = arith.addf %29, %31 : vector<32x256xf32>
    %cst_21 = arith.constant 0.000000e+00 : f32
    %33 = vector.broadcast %cst_21 : f32 to vector<32x256xf32>
    %34 = arith.subf %33, %32 : vector<32x256xf32>
    %35 = math.exp %34 : vector<32x256xf32>
    %cst_22 = arith.constant 1.000000e+00 : f32
    %36 = vector.broadcast %cst_22 : f32 to vector<32x256xf32>
    %37 = arith.addf %36, %35 : vector<32x256xf32>
    %38 = tpu.reciprocal %37 {approx = true} : vector<32x256xf32> -> vector<32x256xf32>
    %39 = vector.broadcast %26 : vector<32x1xf32> to vector<32x256xf32>
    %40 = arith.addf %39, %38 : vector<32x256xf32>
    %41 = arith.mulf %1, %40 : vector<32x256xf32>
    %c0_23 = arith.constant 0 : index
    %c0_24 = arith.constant 0 : index
    %c0_25 = arith.constant 0 : index
    %42 = vector.load %arg8[%c0_23, %c0_24, %c0_25] : memref<1x32x256xf32, #tpu.memory_space<vmem>>, vector<1x32x256xf32>
    %43 = vector.shape_cast %42 : vector<1x32x256xf32> to vector<32x256xf32>
    %44 = vector.shape_cast %41 : vector<32x256xf32> to vector<1x32x256xf32>
    tpu.vector_store %arg8[%c0_23, %c0_24, %c0_25], %44 {strides = array<i32>} : memref<1x32x256xf32, #tpu.memory_space<vmem>>, vector<1x32x256xf32>,
    return
  }
  func.func @transform_0(%arg0: i32) -> (i32, i32, i32) {
    %c0_i32 = arith.constant 0 : i32
    %c0_i32_0 = arith.constant 0 : i32
    %c0_i32_1 = arith.constant 0 : i32
    return %arg0, %c0_i32, %c0_i32_0 : i32, i32, i32
  }
  func.func @transform_1(%arg0: i32) -> (i32, i32) {
    %c0_i32 = arith.constant 0 : i32
    %c0_i32_0 = arith.constant 0 : i32
    %c0_i32_1 = arith.constant 0 : i32
    return %c0_i32, %c0_i32_0 : i32, i32
  }
  func.func @transform_2(%arg0: i32) -> (i32, i32) {
    %c0_i32 = arith.constant 0 : i32
    %c0_i32_0 = arith.constant 0 : i32
    %c0_i32_1 = arith.constant 0 : i32
    return %c0_i32, %c0_i32_0 : i32, i32
  }
  func.func @transform_3(%arg0: i32) -> (i32, i32) {
    %c0_i32 = arith.constant 0 : i32
    %c0_i32_0 = arith.constant 0 : i32
    %c0_i32_1 = arith.constant 0 : i32
    return %c0_i32, %c0_i32_0 : i32, i32
  }
  func.func @transform_4(%arg0: i32) -> (i32, i32) {
    %c0_i32 = arith.constant 0 : i32
    %c0_i32_0 = arith.constant 0 : i32
    %c0_i32_1 = arith.constant 0 : i32
    return %c0_i32, %c0_i32_0 : i32, i32
  }
  func.func @transform_5(%arg0: i32) -> (i32, i32) {
    %c0_i32 = arith.constant 0 : i32
    %c0_i32_0 = arith.constant 0 : i32
    %c0_i32_1 = arith.constant 0 : i32
    return %c0_i32, %c0_i32_0 : i32, i32
  }
  func.func @transform_6(%arg0: i32) -> (i32, i32) {
    %c0_i32 = arith.constant 0 : i32
    %c0_i32_0 = arith.constant 0 : i32
    %c0_i32_1 = arith.constant 0 : i32
    return %c0_i32, %c0_i32_0 : i32, i32
  }
  func.func @transform_7(%arg0: i32) -> (i32, i32, i32) {
    %c0_i32 = arith.constant 0 : i32
    %c0_i32_0 = arith.constant 0 : i32
    %c0_i32_1 = arith.constant 0 : i32
    return %arg0, %c0_i32, %c0_i32_0 : i32, i32, i32
  }
}

</mosaic_0001>

<bundles_post_ra>
// kernel: tpu_custom_call.1
= control target key start
LH: loop header
LB: loop body
LE: loop exit
PB: predicated region body
PF: predicated region fallthrough
CT: control target
= control target key end

     0   :  { %12 = vsyncpa [#allocation3], 0  ;;  %s1410_s0 = inlined_call_operand.hbm [shape: f32[2,32,256], index: 0, kind: input, shape index: {}]   ;;  %s1411_s1 = inlined_call_operand.vmem [shape: f32[8,32], index: 1, kind: input, shape index: {}]   ;;  %s1412_s2 = inlined_call_operand.vmem [shape: f32[8,1], index: 2, kind: input, shape index: {}]   ;;  %s1413_s3 = inlined_call_operand.vmem [shape: f32[32,8], index: 3, kind: input, shape index: {}]   ;;  %s1414_s4 = inlined_call_operand.vmem [shape: f32[32,1], index: 4, kind: input, shape index: {}]   ;;  %s1415_s5 = inlined_call_operand.vmem [shape: bf16[32,32], index: 5, kind: input, shape index: {}]   ;;  %s1416_s6 = inlined_call_operand.vmem [shape: f32[32,1], index: 6, kind: input, shape index: {}]   ;;  %s1417_s7 = inlined_call_operand.hbm [shape: f32[2,32,256], index: 7, kind: output, shape index: {}]  }
   0x1   :  { %14 = vsyncpa [#allocation3 + $0x1], 0 }
   0x2   :  { %15 = vsyncpa [#allocation4], 0 }
   0x3   :  { %17 = vsyncpa [#allocation4 + $0x1], 0  ;;  %s1137_s24 = smov 0   ;;  %s1139_s25 = smov 0  }
   0x4   :  { %s1141_s26 = smov 0   ;;  %s1143_s27 = smov 0  }
   0x5 LB: > { %s1158_s28 = sadd.s32 4294967295, %s1085_s27   ;;  %s823_s29 = sadd.s32 4294967294, %s1085_s27   ;;  %s1085_s27 = sphi %s1143_s27, %s1430_s27   ;;  %s1081_s26 = sphi %s1141_s26, %s1429_s26   ;;  %s1077_s25 = sphi %s1139_s25, %s1428_s25   ;;  %s1073_s24 = sphi %s1137_s24, %s1427_s24  }
   0x6   : > { %s1162_s30 = sadd.s32 1, %s1085_s27   ;;  %s30_s8 = sadd.s32 1, %s1081_s26 }
   0x7   : > { %s27_s9 = ssub.s32 %s1085_s27, %s1162_s30  ;;  %p37_p0 = scmp.ne.s32.totalorder %s1081_s26, %s1077_s25 }
   0x8   : > { %p28_p1 = scmp.eq.s32.totalorder %s27_s9, 0  ;;  %p38_p2 = scmp.eq.s32.totalorder %s1085_s27, 0 }
   0x9   : > { %p43_p3 = scmp.ne.s32.totalorder %s1077_s25, %s1073_s24  ;;  %p44_p4 = scmp.eq.s32.totalorder %s1158_s28, 0 }
   0xa   : > { %s1174_s10 = scalar_select %p28_p1, %s1081_s26, %s30_s8  }
   0xb   : > { %p1176_p5 = por %p38_p2, %p37_p0  ;;  %p1180_p6 = por %p44_p4, %p43_p3 }
   0xc   : > { %p193_p7 = scmp.eq.s32.totalorder %s1158_s28, 1  ;;  %p199_p8 = scmp.eq.s32.totalorder %s823_s29, 1 }
   0xd   : > { %p895_p10 = scmp.lt.s32.totalorder %s1085_s27, 2  ;;  %s237_s15 = sand.u32 1, %s1081_s26  }
   0xe   : > { %p1187_p11 = por %p193_p7, %p37_p0  ;;  %p1191_p12 = por %p199_p8, %p43_p3 }
   0xf   : > { %s846_s16 = sshll.u32 %s1085_s27, 10  ;;  %s826_s17 = sshll.u32 %s237_s15, 6 }
  0x10   : > { %s1421_s13 = scalar_select %p1187_p11, 1, 0 }
  0x11   : > { %s1422_s14 = scalar_select %p1191_p12, 1, 0 }
  0x12   : > { %s1200_s20 = scalar_lea.hbm %s1410_s0, %s846_s16  ;;  %s241_s21 = scalar_lea.vmem [#allocation2], %s826_s17 }
  0x13   : > { %s248_s22 = sshll.u32 %s241_s21, 4  ;;  %p1204_p13 = pnand %p895_p10, %p1176_p5  ;;  %s1208_s22 = int_to_ptr.vmem [resolvable:$true] %s248_s22 }
  0x14   : > { %s1210_s29 = scalar_lea.sflag [#allocation3], %s237_s15  ;;  %s989_s8 = scalar_lea.hbm %s1200_s20, 1024 }
  0x15   : > { %p990_p0 = scmp.ne.s32.totalorder %s1200_s20, %s989_s8  ;;  %p991_p1 = pneg %p1204_p13 }
  0x16   : > { %s994_s16 = scalar_lea.hbm %s1410_s0, 2048  ;;  %p995_p4 = scmp.lt.u32.totalorder %s1200_s20, %s1410_s0 }
  0x17   : > { %p992_p2 = pnand %p991_p1, %p990_p0  ;;  %p996_p5 = scmp.lt.u32.totalorder %s994_s16, %s989_s8 }
  0x18   : > { %p998_p8 = scmp.lt.u32.totalorder %s989_s8, %s1200_s20 }
  0x19   : > { %p993_p3 = pneg %p992_p2  ;;  %p997_p7 = por %p996_p5, %p995_p4 }
  0x1b   : > { %p999_p10 = por %p998_p8, %p997_p7 }
  0x1d   : > { %p1000_p9 = pnand %p999_p10, %p993_p3 }
  0x1f   : > { %1003 = shalt.err (!%p1000_p9)
}
  0x20   : > { %s1004_s15 = scalar_lea.vmem %s1208_s22, 1024  ;;  %s1087_s19 = smov [#allocation2]  }
  0x21   : > { %p1005_p0 = scmp.ne.s32.totalorder %s1208_s22, %s1004_s15  ;;  %s1009_s21 = sshll.u32 %s1087_s19, 4  ;;  %s1010_s21 = int_to_ptr.vmem [resolvable:$false] %s1009_s21 }
  0x22   : > { %s1011_s9 = scalar_lea.vmem %s1010_s21, 2048  ;;  %p1012_p11 = scmp.lt.s32.totalorder %s1208_s22, %s1010_s21 }
  0x23   : > { %p1007_p2 = pnand %p1005_p0, %p991_p1  ;;  %p1013_p4 = scmp.lt.s32.totalorder %s1011_s9, %s1004_s15 }
  0x25   : > { %p1008_p12 = pneg %p1007_p2  ;;  %p1014_p5 = por %p1013_p4, %p1012_p11 }
  0x27   : > { %p1015_p7 = pnand %p1014_p5, %p1008_p12 }
  0x29   : > { %1018 = shalt.err (!%p1015_p7)
}
  0x2a   : > { %s1088_s8 = smov 256   ;;  %s1089_s11 = smov 16  }
  0x2b   : > { %890 = dma.hbm_to_vmem [thread:$0]  (!%p1204_p13), %s1200_s20, 1024, %s1208_s22, %s1210_s29, %s1088_s8, %s1088_s8, %s1089_s11  }
  0x2c   : > { %p829_p9 = scmp.ge.s32.totalorder %s1085_s27, 1  ;;  %p256_p1 = scmp.lt.s32.totalorder %s1085_s27, 3 }
  0x2e   : > { %p257_p3 = pnand %p829_p9, %p256_p1 }
  0x2f   : > { %s1241_s16 = sand.u32 (!%p257_p3), 1, %s1077_s25  }
  0x30   : > { %260 = sbr.rel (%p257_p3) target bundleno = 829 (0x33d), region = 48  ;;  %s830_s17 = sshll.u32 (!%p257_p3), %s1241_s16, 6 }
  0x31   : > { %s263_s18 = scalar_lea.sflag (!%p257_p3), [#allocation3], %s1241_s16  ;;  %s266_s15 = scalar_lea.vmem (!%p257_p3), [#allocation2], %s830_s17 }
  0x37   : > { %1064 = dma.done.wait (%p1180_p6), %s263_s18, 1024  }
  0x38   : > { %1066 = vsyncadd (%p1180_p6), %s263_s18, 4294966272  ;;  %v1251_v0 = vld [vmem:[%s266_s15 + $0x20] sm:$0xff]  ;;  %v1253_v1 = vld [vmem:[%s266_s15 + $0x28] sm:$0xff]  ;;  %v1090_v12 = vmov 0.0|0.0   ;;  %vm1091_vm0 = vmmov 0   ;;  %v1092_v13 = vmov 0.0  }
  0x39   : > { %v1255_v2 = vld [vmem:[%s266_s15] sm:$0xff]  ;;  %v312_v3 = vadd.f32 %v1253_v1, %v1251_v0  ;;  %v1259_v4 = vld [vmem:[%s266_s15 + $0x8] sm:$0xff]  ;;  %v1261_v5 = vld [vmem:[%s266_s15 + $0x30] sm:$0xff]  ;;  %877 = vmatprep.subr.bf16.mxu0 %v1090_v12  ;;  %866 = vmatprep.mubr.msk.f32.mxu0 %vm1091_vm0, %v1092_v13  ;;  %v1093_v18 = vmov 0   ;;  %vm330_vm1 = vcmask 261120   ;;  %vm433_vm2 = vcmask 64512  }
  0x3a   : > { %v1263_v6 = vld [vmem:[%s266_s15 + $0x38] sm:$0xff]  ;;  %v306_v7 = vadd.f32 %v1259_v4, %v1255_v2  ;;  %v1267_v8 = vld [vmem:[%s266_s15 + $0x10] sm:$0xff]  ;;  %v324_v14 = vld [vmem:[%s1412_s2] sm:$0xff]  ;;  %937 = vset.pattern.permute.xlu0 %v1093_v18  ;;  %631 = vmatprep.mubr.bf16.mxu1 %v1093_v18  ;;  %v557_v19 = vpack.c.bf16 %v1261_v5, %v1251_v0  ;;  %s847_s8 = sshll.u32 %s1158_s28, 10  ;;  %s296_s11 = scalar_lea.vmem [#allocation5], %s830_s17 }
  0x3b   : > { %v1269_v9 = vld [vmem:[%s266_s15 + $0x18] sm:$0xff]  ;;  %313 = vadd.xlane.f32.xlu1 %v312_v3  ;;  %v315_v10 = vadd.f32 %v1263_v6, %v1261_v5  ;;  %v555_v16 = vpack.c.bf16 %v1267_v8, %v1255_v2  ;;  %v558_v17 = vpack.c.bf16 %v1263_v6, %v1253_v1  ;;  %v939_v20 = vld [vmem:[%s1415_s5] sm:$0xff]   ;;  %v940_v32 = vld [vmem:[%s1415_s5 + $0x8] sm:$0xff]   ;;  %s750_s18 = sshll.u32 %s296_s11, 4  ;;  %s1362_s17 = scalar_lea.hbm %s1417_s7, %s847_s8  ;;  %s1364_s18 = int_to_ptr.vmem [resolvable:$true] %s750_s18 }
  0x3c   : > { %307 = vadd.xlane.f32.xlu0 %v306_v7  ;;  %v309_v11 = vadd.f32 %v1269_v9, %v1267_v8  ;;  %v556_v15 = vpack.c.bf16 %v1269_v9, %v1259_v4  ;;  %938 = vset.pattern.permute.xlu1 %v1093_v18  ;;  %v323_v31 = vld [vmem:[%s1411_s1] sm:$0xff]  ;;  %v410_v35 = vld [vmem:[%s1414_s4 + $0x8] sm:$0xff]  ;;  %v411_v36 = vld [vmem:[%s1414_s4 + $0x10] sm:$0xff]  ;;  %s737_s12 = scalar_lea.sflag [#allocation4], %s1241_s16  ;;  %s1019_s20 = scalar_lea.vmem %s1364_s18, 1024 }
  0x3d   : > { %v405_v33 = vld [vmem:[%s1413_s3] sm:$0xff]  ;;  %v412_v37 = vld [vmem:[%s1414_s4 + $0x18] sm:$0xff]  ;;  %v560_v39 = vld [vmem:[%s1416_s6 + $0x8] sm:$0xff]  ;;  %p1020_p6 = scmp.ne.s32.totalorder %s1364_s18, %s1019_s20  ;;  %p1424_p11 = scmp.ne.s32.totalorder %s1421_s13, 0 }
  0x3e   : > { %599 = vmatprep.subr.bf16.mxu1 %v556_v15  ;;  %v409_v34 = vld [vmem:[%s1414_s4] sm:$0xff]  ;;  %v561_v41 = vld [vmem:[%s1416_s6 + $0x10] sm:$0xff]  ;;  %v562_v42 = vld [vmem:[%s1416_s6 + $0x18] sm:$0xff]  ;;  %s1094_s22 = smov [#allocation5]  }
  0x3f   : > { %316 = vadd.xlane.f32.xlu1 %v315_v10  ;;  %600 = vmatpush1.bf16.msra.mxu1 %v555_v16  ;;  %v559_v38 = vld [vmem:[%s1416_s6] sm:$0xff]  ;;  %v406_v51 = vld [vmem:[%s1413_s3 + $0x8] sm:$0xff]  ;;  %v407_v52 = vld [vmem:[%s1413_s3 + $0x10] sm:$0xff]  ;;  %p1021_p12 = pnand %p1020_p6, %p1424_p11  ;;  %s1023_s23 = sshll.u32 %s1094_s22, 4  ;;  %s1024_s23 = int_to_ptr.vmem [resolvable:$false] %s1023_s23 }
  0x40   : > { %310 = vadd.xlane.f32.xlu0 %v309_v11  ;;  %601 = vmatprep.subr.bf16.mxu1 %v558_v17  ;;  %v408_v53 = vld [vmem:[%s1413_s3 + $0x18] sm:$0xff]  ;;  %s1025_s29 = scalar_lea.vmem %s1024_s23, 2048  ;;  %p1026_p8 = scmp.lt.s32.totalorder %s1364_s18, %s1024_s23 }
  0x41   : > { %p1022_p13 = pneg %p1021_p12  ;;  %p1027_p10 = scmp.lt.s32.totalorder %s1025_s29, %s1019_s20 }
  0x43   : > { %602 = vmatpush1.bf16.msra.mxu1 %v557_v19  ;;  %p1028_p0 = por %p1027_p10, %p1026_p8 }
  0x45   : > { %p1029_p2 = pnand %p1028_p0, %p1022_p13 }
  0x46   : > { %839 = vmatmul.mubr.msk.bf16.vlgmr.msra.gmra.mrb[0].mxu1 %vm330_vm1, %v939_v20 }
  0x47   : > { %641 = vmatprep.mubr.bf16.mxu1 %v1093_v18 }
  0x4e   : > { %840 = vmatmul.mubr.msk.bf16.gmra.mrb[4].mxu1 %vm330_vm1, %v940_v32 }
  0x50   : > { %415 = vperm.xlu1 %938, %v409_v34  }
  0x54   : > { %420 = vperm.xlu1 %938, %v410_v35  }
  0x56   : > { %327 = vperm.xlu0 %937, %v324_v14  }
  0x58   : > { %425 = vperm.xlu1 %938, %v411_v36  }
  0x5c   : > { %430 = vperm.xlu1 %938, %v412_v37  }
  0x60   : > { %565 = vperm.xlu1 %938, %v559_v38  }
  0x64   : > { %570 = vperm.xlu1 %938, %v560_v39  }
  0x68   : > { %575 = vperm.xlu1 %938, %v561_v41  }
  0x6c   : > { %580 = vperm.xlu1 %938, %v562_v42  }
  0xc8   : > { %v314_v21 = vpop.xlane.xlu1 %313 }
  0xc9   : > { %v308_v22 = vpop.xlane.xlu0 %307  ;;  %v321_v27 = vmul.f32 0.00390625, %v314_v21 }
  0xca   : > { %v319_v25 = vmul.f32 0.00390625, %v308_v22 }
  0xcc   : > { %v317_v23 = vpop.xlane.xlu1 %316 }
  0xcd   : > { %v311_v24 = vpop.xlane.xlu0 %310  ;;  %v322_v28 = vmul.f32 0.00390625, %v317_v23 }
  0xce   : > { %v320_v26 = vmul.f32 0.00390625, %v311_v24 }
  0xcf   : > { %v881_v30 = vpack.c.bf16 %v322_v28, %v321_v27 }
  0xd0   : > { %v878_v29 = vpack.c.bf16 %v320_v26, %v319_v25  ;;  %v416_v58 = vpop.permute.xlu1 %415 }
  0xd2   : > { %879 = vmatpush3.bf16.msra.mxu0 %v878_v29 }
  0xd3   : > { %880 = vmatprep.subr.bf16.mxu0 %v1090_v12 }
  0xd4   : > { %v421_v59 = vpop.permute.xlu1 %420 }
  0xd5   : > { %v328_v46 = vpop.permute.xlu0 %327 }
  0xd6   : > { %882 = vmatpush3.bf16.msra.mxu0 %v881_v30 }
  0xd8   : > { %v426_v60 = vpop.permute.xlu1 %425 }
  0xd9   : > { %867 = vmatmul.mubr.msk.f32.vlgmr.msra.gmra.mrb[0].mxu0 %vm330_vm1, %v323_v31 }
  0xda   : > { %871 = vmatprep.mubr.msk.f32.mxu0 %vm433_vm2, %v405_v33 }
  0xdc   : > { %v431_v10 = vpop.permute.xlu1 %430 }
  0xe0   : > { %v566_v34 = vpop.permute.xlu1 %565 }
  0xe4   : > { %v571_v35 = vpop.permute.xlu1 %570 }
  0xe8   : > { %v576_v36 = vpop.permute.xlu1 %575 }
  0xec   : > { %v581_v41 = vpop.permute.xlu1 %580 }
 0x119   : > { %v1320_v40 = vpop.f32.mrb[0].mxu1 }
 0x11a   : > { %v1328_v43 = vpop.f32.mrb[1].mxu1  ;;  %v634_v37 = vadd.f32 %v1320_v40, %v566_v34 }
 0x11b   : > { %v1330_v44 = vpop.f32.mrb[2].mxu1  ;;  %v636_v42 = vadd.f32 %v1328_v43, %v566_v34 }
 0x11c   : > { %v1332_v45 = vpop.f32.mrb[3].mxu1  ;;  %v638_v38 = vadd.f32 %v1330_v44, %v571_v35 }
 0x11d   : > { %v640_v39 = vadd.f32 %v1332_v45, %v571_v35 }
 0x121   : > { %v643_v54 = vpop.f32.mrb[4].mxu1 }
 0x122   : > { %v645_v55 = vpop.f32.mrb[5].mxu1 }
 0x123   : > { %v647_v56 = vpop.f32.mrb[6].mxu1 }
 0x124   : > { %v649_v57 = vpop.f32.mrb[7].mxu1 }
 0x1ac   : > { %v400_v47 = vpop.f32.mrb[0].mxu0 }
 0x1ad   : > { %v401_v48 = vadd.f32 %v400_v47, %v328_v46  ;;  %v868_v49 = vpop.f32.mrb[1].mxu0  ;;  %v652_v46 = vsub.f32 0.0, %v634_v37  ;;  %v644_v47 = vadd.f32 %v643_v54, %v576_v36 }
 0x1ae   : > { %v648_v49 = vadd.f32 %v647_v56, %v581_v41 }
 0x1af   : > { %v404_v50 = vmax.f32 %v401_v48, 0.0  ;;  %v654_v48 = vsub.f32 0.0, %v638_v38 }
 0x1b1   : > { %869 = vmatprep.subr.mxu0 %v404_v50 }
 0x1b2   : > { %870 = vmatpush3.msra.mxu0 %v404_v50  ;;  %v655_v50 = vsub.f32 0.0, %v640_v39 }
 0x1b3   : > { %872 = vmatmul.mubr.msk.f32.vlgmr.msra.gmra.mrb[2].mxu0 %vm433_vm2, %v406_v51  ;;  %v650_v51 = vadd.f32 %v649_v57, %v581_v41 }
 0x1b4   : > { %874 = vmatprep.mubr.msk.f32.mxu0 %vm433_vm2, %v407_v52  ;;  %v653_v52 = vsub.f32 0.0, %v636_v42  ;;  %v666_v40 = vmul.f32 1.442695, %v655_v50 }
 0x1b6   : > { %v662_v44 = vmul.f32 1.442695, %v653_v52 }
 0x1b7   : > { %875 = vmatmul.mubr.msk.f32.gmra.mrb[4].mxu0 %vm433_vm2, %v408_v53  ;;  %v646_v53 = vadd.f32 %v645_v55, %v576_v36 }
 0x286   : > { %v873_v61 = vpop.f32.mrb[2].mxu0 }
 0x287   : > { %v518_v62 = vadd.f32 %v873_v61, %v421_v59  ;;  %v512_v63 = vpop.f32.mrb[3].mxu0  ;;  %v656_v59 = vsub.f32 0.0, %v644_v47  ;;  %v658_v61 = vsub.f32 0.0, %v648_v49 }
 0x288   : > { %v513_v3 = vadd.f32 %v512_v63, %v416_v58  ;;  %v660_v58 = vmul.f32 1.442695, %v652_v46  ;;  %v657_v63 = vsub.f32 0.0, %v646_v53 }
 0x289   : > { %v532_v7 = vsub.f32 0.0, %v518_v62  ;;  %v659_v62 = vsub.f32 0.0, %v650_v51  ;;  %v668_v45 = vmul.f32 1.442695, %v656_v59  ;;  %v672_v43 = vmul.f32 1.442695, %v658_v61 }
 0x28a   : > { %v531_v11 = vsub.f32 0.0, %v513_v3  ;;  %v876_v12 = vpop.f32.mrb[4].mxu0  ;;  %v670_v56 = vmul.f32 1.442695, %v657_v63 }
 0x28b   : > { %v537_v13 = vmul.f32 1.442695, %v532_v7  ;;  %v528_v14 = vadd.f32 %v876_v12, %v431_v10  ;;  %v522_v15 = vpop.f32.mrb[5].mxu0  ;;  %v674_v54 = vmul.f32 1.442695, %v659_v62 }
 0x28c   : > { %v535_v16 = vmul.f32 1.442695, %v531_v11  ;;  %v523_v17 = vadd.f32 %v522_v15, %v426_v60  ;;  %v664_v60 = vmul.f32 1.442695, %v654_v48 }
 0x28d   : > { %941 = vpow2.f32 %v537_v13  ;;  %v534_v18 = vsub.f32 0.0, %v528_v14 }
 0x28e   : > { %943 = vpow2.f32 %v535_v16  ;;  %v533_v19 = vsub.f32 0.0, %v523_v17 }
 0x28f   : > { %v541_v20 = vmul.f32 1.442695, %v534_v18 }
 0x290   : > { %v539_v21 = vmul.f32 1.442695, %v533_v19 }
 0x291   : > { %945 = vpow2.f32 %v541_v20 }
 0x292   : > { %947 = vpow2.f32 %v539_v21 }
 0x297   : > { %v942_v22 = vpop.eup %941 }
 0x298   : > { %v944_v23 = vpop.eup %943  ;;  %v544_v24 = vadd.f32 1.0, %v942_v22 }
 0x299   : > { %v543_v25 = vadd.f32 1.0, %v944_v23 }
 0x29a   : > { %949 = vrcp.f32 %v544_v24 }
 0x29b   : > { %v946_v26 = vpop.eup %945  ;;  %951 = vrcp.f32 %v543_v25 }
 0x29c   : > { %v948_v27 = vpop.eup %947  ;;  %v546_v28 = vadd.f32 1.0, %v946_v26 }
 0x29d   : > { %v545_v29 = vadd.f32 1.0, %v948_v27 }
 0x29e   : > { %953 = vrcp.f32 %v546_v28 }
 0x29f   : > { %955 = vrcp.f32 %v545_v29 }
 0x2a0   : > { %957 = vpow2.f32 %v660_v58 }
 0x2a1   : > { %959 = vpow2.f32 %v664_v60 }
 0x2a2   : > { %961 = vpow2.f32 %v666_v40 }
 0x2a3   : > { %963 = vpow2.f32 %v662_v44 }
 0x2a4   : > { %v950_v30 = vpop.eup %949  ;;  %965 = vpow2.f32 %v668_v45 }
 0x2a5   : > { %v952_v31 = vpop.eup %951  ;;  %699 = vperm.xlu1 %938, %v950_v30   ;;  %967 = vpow2.f32 %v672_v43 }
 0x2a6   : > { %694 = vperm.xlu0 %937, %v952_v31   ;;  %969 = vpow2.f32 %v674_v54 }
 0x2a7   : > { %971 = vpow2.f32 %v670_v56 }
 0x2a8   : > { %v954_v32 = vpop.eup %953 }
 0x2a9   : > { %v956_v33 = vpop.eup %955  ;;  %709 = vperm.xlu1 %938, %v954_v32  }
 0x2aa   : > { %704 = vperm.xlu0 %937, %v956_v33   ;;  %v958_v55 = vpop.eup %957 }
 0x2ab   : > { %v960_v57 = vpop.eup %959  ;;  %v676_v10 = vadd.f32 1.0, %v958_v55 }
 0x2ac   : > { %v962_v3 = vpop.eup %961  ;;  %v678_v12 = vadd.f32 1.0, %v960_v57 }
 0x2ad   : > { %v964_v7 = vpop.eup %963  ;;  %v679_v14 = vadd.f32 1.0, %v962_v3  ;;  %973 = vrcp.f32 %v676_v10 }
 0x2ae   : > { %v966_v11 = vpop.eup %965  ;;  %v677_v16 = vadd.f32 1.0, %v964_v7  ;;  %975 = vrcp.f32 %v678_v12 }
 0x2af   : > { %v968_v13 = vpop.eup %967  ;;  %v680_v18 = vadd.f32 1.0, %v966_v11  ;;  %977 = vrcp.f32 %v679_v14 }
 0x2b0   : > { %v970_v15 = vpop.eup %969  ;;  %v682_v19 = vadd.f32 1.0, %v968_v13  ;;  %979 = vrcp.f32 %v677_v16 }
 0x2b1   : > { %v972_v17 = vpop.eup %971  ;;  %v683_v20 = vadd.f32 1.0, %v970_v15  ;;  %981 = vrcp.f32 %v680_v18 }
 0x2b2   : > { %v681_v21 = vadd.f32 1.0, %v972_v17  ;;  %983 = vrcp.f32 %v682_v19 }
 0x2b3   : > { %985 = vrcp.f32 %v683_v20 }
 0x2b4   : > { %987 = vrcp.f32 %v681_v21 }
 0x2b7   : > { %v974_v22 = vpop.eup %973 }
 0x2b8   : > { %v976_v23 = vpop.eup %975 }
 0x2b9   : > { %v978_v24 = vpop.eup %977 }
 0x2ba   : > { %v980_v26 = vpop.eup %979 }
 0x2bb   : > { %v982_v30 = vpop.eup %981 }
 0x2bc   : > { %v984_v33 = vpop.eup %983 }
 0x2bd   : > { %v986_v36 = vpop.eup %985 }
 0x2be   : > { %v988_v41 = vpop.eup %987 }
 0x324   : > { %v700_v25 = vpop.permute.xlu1 %699 }
 0x325   : > { %v714_v27 = vadd.f32 %v976_v23, %v700_v25  ;;  %v715_v28 = vadd.f32 %v978_v24, %v700_v25  ;;  %v695_v29 = vpop.permute.xlu0 %694 }
 0x326   : > { %v712_v31 = vadd.f32 %v974_v22, %v695_v29  ;;  %v713_v32 = vadd.f32 %v980_v26, %v695_v29 }
 0x327   : > { %v722_v34 = vmul.f32 %v714_v27, %v1267_v8  ;;  %v723_v35 = vmul.f32 %v715_v28, %v1269_v9 }
 0x328   : > { %v720_v37 = vmul.f32 %v712_v31, %v1255_v2  ;;  %v721_v38 = vmul.f32 %v713_v32, %v1259_v4  ;;  %v710_v39 = vpop.permute.xlu1 %709 }
 0x329   : > { %730 = vst [vmem:[%s296_s11 + $0x10] sm:$0xff] %v722_v34  ;;  %731 = vst [vmem:[%s296_s11 + $0x18] sm:$0xff] %v723_v35  ;;  %v718_v42 = vadd.f32 %v984_v33, %v710_v39  ;;  %v719_v46 = vadd.f32 %v986_v36, %v710_v39  ;;  %v705_v47 = vpop.permute.xlu0 %704 }
 0x32a   : > { %728 = vst [vmem:[%s296_s11] sm:$0xff] %v720_v37  ;;  %729 = vst [vmem:[%s296_s11 + $0x8] sm:$0xff] %v721_v38  ;;  %v716_v8 = vadd.f32 %v982_v30, %v705_v47  ;;  %v717_v9 = vadd.f32 %v988_v41, %v705_v47 }
 0x32b   : > { %v726_v2 = vmul.f32 %v718_v42, %v1261_v5  ;;  %v727_v4 = vmul.f32 %v719_v46, %v1263_v6 }
 0x32c   : > { %v724_v48 = vmul.f32 %v716_v8, %v1251_v0  ;;  %v725_v49 = vmul.f32 %v717_v9, %v1253_v1 }
 0x32d   : > { %734 = vst [vmem:[%s296_s11 + $0x30] sm:$0xff] %v726_v2  ;;  %735 = vst [vmem:[%s296_s11 + $0x38] sm:$0xff] %v727_v4 }
 0x32e   : > { %732 = vst [vmem:[%s296_s11 + $0x20] sm:$0xff] %v724_v48  ;;  %733 = vst [vmem:[%s296_s11 + $0x28] sm:$0xff] %v725_v49 }
 0x32f   : > { %1032 = shalt.err (!%p1029_p2)
}
 0x330   : > { %s1033_s19 = scalar_lea.hbm %s1362_s17, 1024  ;;  %s1037_s8 = scalar_lea.hbm %s1417_s7, 2048 }
 0x331   : > { %p1034_p4 = scmp.ne.s32.totalorder %s1362_s17, %s1033_s19  ;;  %p1038_p9 = scmp.lt.u32.totalorder %s1362_s17, %s1417_s7 }
 0x332   : > { %p1039_p1 = scmp.lt.u32.totalorder %s1037_s8, %s1033_s19  ;;  %p1041_p6 = scmp.lt.u32.totalorder %s1033_s19, %s1362_s17 }
 0x333   : > { %p1035_p5 = pnand %p1034_p4, %p1424_p11 }
 0x334   : > { %p1040_p3 = por %p1039_p1, %p1038_p9 }
 0x335   : > { %p1036_p7 = pneg %p1035_p5 }
 0x336   : > { %p1042_p12 = por %p1041_p6, %p1040_p3 }
 0x338   : > { %p1043_p13 = pnand %p1042_p12, %p1036_p7 }
 0x33a   : > { %1046 = shalt.err (!%p1043_p13)
}
 0x33b   : > { %s1095_s15 = smov 256   ;;  %s1096_s20 = smov 16  }
 0x33c   : > { %885 = dma.vmem_to_hbm [thread:$0]  (%p1424_p11), %s1364_s18, 1024, %s1362_s17, %s737_s12, %s1095_s15, %s1095_s15, %s1096_s20  }
 0x33d PF: > { %s765_s22 = sand.u32 1, %s1073_s24   ;;  %p1425_p8 = scmp.ne.s32.totalorder %s1422_s14, 0 }
 0x33e   : > { %p1426_p10 = scmp.ge.s32.totalorder %s1085_s27, 2  ;;  %s766_s23 = scalar_lea.sflag [#allocation4], %s765_s22 }
 0x340   : > { %p892_p0 = pnand %p1426_p10, %p1425_p8 }
 0x342   : > { %1068 = dma.done.wait (!%p892_p0), %s766_s23, 1024  }
 0x343   : > { %1070 = vsyncadd (!%p892_p0), %s766_s23, 4294966272  ;;  %p20_p2 = scmp.ge.s32.totalorder %s1162_s30, 4   ;;  %s1427_s24 = smov %s1077_s25 }
 0x344   : > { %s1428_s25 = smov %s1081_s26  ;;  %s1429_s26 = smov %s1174_s10 }
 0x345   : > { %s1430_s27 = smov %s1162_s30  ;;  %22 = sbr.rel (!%p20_p2) target bundleno = 5 (0x5), region = 93 }
 0x34c   :  { %771 = vsyncpa [#allocation3], 1 }
 0x34d   :  { %773 = vsyncpa [#allocation3 + $0x1], 1 }
 0x34e   :  { %774 = vsyncpa [#allocation4], 1 }
 0x34f   :  { %776 = vsyncpa [#allocation4 + $0x1], 1 }

</bundles_post_ra>
